<compile_context>
chip_gen: v6e
topology: v6e:2x2x1
jax: 0.10.0
libtpu: 0.0.40
codegen_flags: <defaults>
</compile_context>

<pallas_src>
import functools

import jax
import jax.numpy as jnp
from jax.experimental import pallas as pl
from jax.experimental.pallas import tpu as pltpu

EMB = 300     # conv kernel width == embedding size, fixed by the module
C_OUT = 10    # conv output channels
K_H = 3       # conv kernel height (over the sequence axis)


def _cnn_kernel(x_ref, wc_ref, bc_ref, wf_ref, bf_ref,      # inputs
                rating_ref,                                  # output
                acc_ref, prev0_ref, prev1_ref,               # VMEM scratch
                *, L, TB, TL, NT):
    """One (B-tile, L-tile) grid step.

    x_ref    : (TB, TL, EMB)   sequence rows [t*TL, (t+1)*TL)
    wc_ref   : (EMB, 3*C_OUT)  fused conv weights [W0 | W1 | W2]
    acc_ref  : (TB, C_OUT)     running max of pre-bias conv outputs
    prev0/1  : W0@x / W1@x partial products of the last 2 / 1 rows of the
               previous L-tile (so every conv row emitted here is complete).
    """
    t = pl.program_id(1)

    @pl.when(t == 0)
    def _init():
        acc_ref[...] = jnp.full(acc_ref.shape, -jnp.inf, dtype=acc_ref.dtype)
        # prev0 row 0 <- -inf : kills the nonexistent conv row o = -1 of the
        #                       first tile without any runtime masking.
        # prev0 row 1 <- 0    : zero left-pad contribution for conv row o = 0.
        row = jax.lax.broadcasted_iota(jnp.int32, prev0_ref.shape, 1)
        prev0_ref[...] = jnp.where(row == 0, -jnp.inf, 0.0).astype(
            prev0_ref.dtype)
        prev1_ref[...] = jnp.zeros(prev1_ref.shape, dtype=prev1_ref.dtype)

    # Carries from the previous L-tile (read before they are overwritten).
    p0 = prev0_ref[...]          # (TB, 2, C): [W0 @ x[t*TL-2], W0 @ x[t*TL-1]]
    p1 = prev1_ref[...]          # (TB, 1, C): [W1 @ x[t*TL-1]]

    # --- single fused MXU pass:  (TB*TL, 300) @ (300, 30) -------------------
    x = x_ref[...]
    if TB == 1 or TL % 8 == 0:
        z = jnp.dot(x.reshape(TB * TL, EMB), wc_ref[...],
                    preferred_element_type=jnp.float32)
        z = z.reshape(TB, TL, K_H * C_OUT)
    else:   # non-sublane-aligned collapse: keep the batched contraction form
        z = jnp.einsum('ble,ec->blc', x, wc_ref[...],
                       preferred_element_type=jnp.float32)
    zx0 = z[:, :, 0 * C_OUT:1 * C_OUT]      # W0 @ x_local[row]
    zx1 = z[:, :, 1 * C_OUT:2 * C_OUT]      # W1 @ x_local[row]
    zx2 = z[:, :, 2 * C_OUT:3 * C_OUT]      # W2 @ x_local[row]

    # Conv output row o = t*TL - 1 + j  (pre-bias, pre-ReLU):
    #   y[j] = W0 @ x_local[j-2] + W1 @ x_local[j-1] + W2 @ x_local[j]
    # Boundary rows j = 0, 1 take their missing terms from the carries.
    y0 = p0[:, 0, :] + p1[:, 0, :] + zx2[:, 0, :]            # o = t*TL - 1
    y1 = p0[:, 1, :] + zx1[:, 0, :] + zx2[:, 1, :]           # o = t*TL

    def _update(n_bulk, use_y1):
        """Fold rows j = 0 .. 1 + n_bulk of this tile into the running max."""
        m = jnp.maximum(acc_ref[...], y0)
        if use_y1:
            m = jnp.maximum(m, y1)
        if n_bulk > 0:   # bulk rows j = 2 .. 1 + n_bulk: pure shifted adds
            yb = (zx0[:, 0:n_bulk, :] + zx1[:, 1:1 + n_bulk, :]
                  + zx2[:, 2:2 + n_bulk, :])
            m = jnp.maximum(m, jnp.max(yb, axis=1))
        acc_ref[...] = m

    rem = L - (NT - 1) * TL            # valid x rows in the last tile, [1, TL]
    if rem == TL:                      # every tile is full -> never mask
        _update(TL - 2, True)
    else:
        @pl.when(t != NT - 1)          # interior tiles: zero masking work
        def _interior():
            _update(TL - 2, True)

        @pl.when(t == NT - 1)          # ragged last tile: static slices only
        def _last():
            _update(rem - 2, rem >= 2)

    # Carry the partial products of this tile's last rows to the next tile
    # (harmless on the last tile: re-initialized at the next t == 0).
    prev0_ref[...] = zx0[:, TL - 2:TL, :]
    prev1_ref[...] = zx1[:, TL - 1:TL, :]

    @pl.when(t == NT - 1)
    def _finalize():
        # Conv row o = L-1 uses the zero right-pad:  W0 @ x[L-2] + W1 @ x[L-1].
        if rem >= 2:
            y_last = zx0[:, rem - 2, :] + zx1[:, rem - 1, :]
        else:      # rem == 1: x[L-2] lives in the previous tile's carry
            y_last = p0[:, 1, :] + zx1[:, 0, :]
        m = jnp.maximum(acc_ref[...], y_last)
        # bias-add and ReLU commute with the max (monotone) -> fold past it.
        doc = jnp.maximum(m + bc_ref[...], 0.0)                   # (TB, C)
        rating_ref[0] = (jnp.dot(doc, wf_ref[...],
                                 preferred_element_type=jnp.float32)
                         + bf_ref[...])


def _x_block_spec(TB, TL, NT):
    """BlockSpec for the streaming x input; triple-buffer it when supported."""
    index_map = lambda b, t: (b, t, 0)
    if NT >= 2 and hasattr(pl, "Buffered"):
        try:
            return pl.BlockSpec((TB, TL, EMB), index_map,
                                pipeline_mode=pl.Buffered(3))
        except TypeError:          # older jax without pipeline_mode kwarg
            pass
    return pl.BlockSpec((TB, TL, EMB), index_map)


def cnn_forward(x, y_target, params, mode='train', *, tile_l=None):
    """x: (B, L, 300) == data[0] (f32 or bf16);  y_target: (B, 1) == data[1]."""
    B, L, E = x.shape
    assert E == EMB
    assert L >= 2, "sequence length must be >= 2"

    # Batch tile: >= 2 blocks whenever B >= 2 so the "parallel" grid axis can
    # feed both v7x TensorCores; capped at 8 rows for v5e/v6e.
    TB = max(1, min(8, pl.cdiv(B, 2)))
    TL = min(512, L) if tile_l is None else min(tile_l, L)
    NB = pl.cdiv(B, TB)
    NT = pl.cdiv(L, TL)

    # Fuse the three (300, 10) conv taps into one (300, 30) RHS so every x
    # tile streams through the MXU exactly once.  Weights follow x's dtype
    # (feeding bf16 activations halves the HBM-bound read; accumulation stays
    # f32 via preferred_element_type).  Default f32 matches torch exactly.
    wc = jnp.transpose(params['conv_w'], (1, 0, 2)).reshape(EMB, K_H * C_OUT)
    wc = wc.astype(x.dtype)

    kernel = functools.partial(_cnn_kernel, L=L, TB=TB, TL=TL, NT=NT)

    itemsize = jnp.dtype(x.dtype).itemsize
    flops = 2 * B * L * EMB * (K_H * C_OUT) + 2 * B * C_OUT
    bytes_accessed = (itemsize * (B * L * EMB + EMB * K_H * C_OUT)
                      + 4 * (2 * C_OUT + 2 + NB * TB))

    rating = pl.pallas_call(
        kernel,
        out_shape=jax.ShapeDtypeStruct((NB, TB, 1), jnp.float32),
        grid=(NB, NT),
        in_specs=[
            _x_block_spec(TB, TL, NT),                               # x
            pl.BlockSpec((EMB, K_H * C_OUT), lambda b, t: (0, 0)),   # conv W
            pl.BlockSpec((1, C_OUT), lambda b, t: (0, 0)),           # conv b
            pl.BlockSpec((C_OUT, 1), lambda b, t: (0, 0)),           # final W
            pl.BlockSpec((1, 1), lambda b, t: (0, 0)),               # final b
        ],
        out_specs=pl.BlockSpec((1, TB, 1), lambda b, t: (b, 0, 0)),
        scratch_shapes=[pltpu.VMEM((TB, C_OUT), jnp.float32),        # run max
                        pltpu.VMEM((TB, 2, C_OUT), jnp.float32),     # W0 carry
                        pltpu.VMEM((TB, 1, C_OUT), jnp.float32)],    # W1 carry
        compiler_params=pltpu.CompilerParams(
            dimension_semantics=("parallel", "arbitrary"),
            vmem_limit_bytes=32 * 1024 * 1024),
        cost_estimate=pl.CostEstimate(flops=flops, transcendentals=0,
                                      bytes_accessed=bytes_accessed),
    )(x, wc, params['conv_b'], params['fin_w'], params['fin_b'])

    rating = rating.reshape(NB * TB, 1)[:B]                          # (B, 1)
    if mode == 'train':
        # nn.MSELoss() (mean reduction): trivial scalar glue outside the kernel.
        return jnp.mean((rating - y_target) ** 2)
    return rating.reshape(B)


def init_params(key):
    k1, k2, k3, k4 = jax.random.split(key, 4)
    # torch Conv2d weight layout: (out_c=10, in_c=1, kh=3, kw=300)
    conv_w_torch = jax.random.uniform(k1, (C_OUT, 1, K_H, EMB),
                                      minval=-0.05, maxval=0.05,
                                      dtype=jnp.float32)
    conv_w = jnp.transpose(conv_w_torch[:, 0], (1, 2, 0))     # (3, 300, 10)
    conv_b = jax.random.uniform(k2, (1, C_OUT), minval=-0.05, maxval=0.05,
                                dtype=jnp.float32)
    # torch Linear weight layout: (out=1, in=10)
    fin_w_torch = jax.random.uniform(k3, (1, C_OUT), minval=-0.3, maxval=0.3,
                                     dtype=jnp.float32)
    fin_w = fin_w_torch.T                                     # (10, 1)
    fin_b = jax.random.uniform(k4, (1, 1), minval=-0.3, maxval=0.3,
                               dtype=jnp.float32)
    return {'conv_w': conv_w, 'conv_b': conv_b, 'fin_w': fin_w, 'fin_b': fin_b}


def _reference(x, params):
    """Plain-JAX replica of the torch forward, for correctness checking."""
    B, L, _ = x.shape
    xp = jnp.pad(x, ((0, 0), (1, 1), (0, 0)))
    conv = jnp.zeros((B, L, C_OUT), jnp.float32)
    for dh in range(K_H):
        conv = conv + jnp.einsum('ble,ec->blc', xp[:, dh:dh + L, :],
                                 params['conv_w'][dh])
    y = jnp.maximum(conv + params['conv_b'].reshape(1, 1, C_OUT), 0.0)
    doc = jnp.max(y, axis=1)
    rating = doc @ params['fin_w'] + params['fin_b']
    return doc, rating


if __name__ == "__main__":
    key = jax.random.PRNGKey(0)
    kp, kd = jax.random.split(key)
    params = init_params(kp)

    # (B, L, tile_l): a small single-tile case plus a multi-tile case that
    # exercises cross-tile carries, the ragged last L-tile and a ragged
    # batch tile — all at tiny shapes.
    configs = [(2, 8, None), (3, 21, 8)]
    for B, L, tile_l in configs:
        kx, ky, kd = jax.random.split(kd, 3)
        data0 = jax.random.normal(kx, (B, L, EMB), dtype=jnp.float32)  # data[0]
        data1 = jax.random.normal(ky, (B, 1), dtype=jnp.float32)       # data[1]

        loss = cnn_forward(data0, data1, params, mode='train', tile_l=tile_l)
        ratings = cnn_forward(data0, data1, params, mode='eval', tile_l=tile_l)
        jax.block_until_ready((loss, ratings))

        # Correctness check against the plain-JAX replica of the torch module.
        _, rating_ref = _reference(data0, params)
        ref_loss = jnp.mean((rating_ref - data1) ** 2)
        assert loss.shape == () and ratings.shape == (B,)
        assert jnp.allclose(ratings, rating_ref.reshape(B), rtol=1e-3, atol=1e-3)
        assert jnp.allclose(loss, ref_loss, rtol=1e-3, atol=1e-3)

    print("KERNEL_OK")
</pallas_src>

<mosaic_0001>
module attributes {stable_mosaic.version = 11 : i64} {
  func.func @_cnn_kernel(%arg0: i32, %arg1: i32, %arg2: memref<1x8x300xf32, #tpu.memory_space<vmem>>, %arg3: memref<300x30xf32, #tpu.memory_space<vmem>>, %arg4: memref<1x10xf32, #tpu.memory_space<vmem>>, %arg5: memref<10x1xf32, #tpu.memory_space<vmem>>, %arg6: memref<1x1xf32, #tpu.memory_space<vmem>>, %arg7: memref<1x1x1xf32, #tpu.memory_space<vmem>>, %arg8: memref<1x10xf32, #tpu.memory_space<vmem>>, %arg9: memref<1x2x10xf32, #tpu.memory_space<vmem>>, %arg10: memref<1x1x10xf32, #tpu.memory_space<vmem>>) attributes {dimension_semantics = [#tpu.dimension_semantics<parallel>, #tpu.dimension_semantics<arbitrary>], iteration_bounds = array<i64: 2, 1>, scalar_prefetch = 0 : i64, scratch_operands = 3 : i64, tpu.core_type = #tpu.core_type<tc>, window_params = [{transform_indices = @transform_0, window_bounds = array<i64: 1, 8, 300>}, {pipeline_mode = #tpu.pipeline_mode<synchronous>, transform_indices = @transform_1, window_bounds = array<i64: 300, 30>}, {pipeline_mode = #tpu.pipeline_mode<synchronous>, transform_indices = @transform_2, window_bounds = array<i64: 1, 10>}, {pipeline_mode = #tpu.pipeline_mode<synchronous>, transform_indices = @transform_3, window_bounds = array<i64: 10, 1>}, {pipeline_mode = #tpu.pipeline_mode<synchronous>, transform_indices = @transform_4, window_bounds = array<i64: 1, 1>}, {transform_indices = @transform_5, window_bounds = array<i64: 1, 1, 1>}]} {
    %c0_i32 = arith.constant 0 : i32
    %0 = arith.cmpi eq, %arg1, %c0_i32 : i32
    %1 = arith.extui %0 : i1 to i32
    %c0_i32_0 = arith.constant 0 : i32
    %2 = arith.cmpi ne, %1, %c0_i32_0 : i32
    scf.if %2 {
      %cst_24 = arith.constant 0xFF800000 : f32
      %46 = vector.broadcast %cst_24 : f32 to vector<1x10xf32>
      %c0_25 = arith.constant 0 : index
      %c0_26 = arith.constant 0 : index
      %47 = vector.load %arg8[%c0_25, %c0_26] : memref<1x10xf32, #tpu.memory_space<vmem>>, vector<1x10xf32>
      tpu.vector_store %arg8[%c0_25, %c0_26], %46 {strides = array<i32>} : memref<1x10xf32, #tpu.memory_space<vmem>>, vector<1x10xf32>,
      %48 = tpu.iota {dimensions = array<i32: 1>} : vector<1x2x10xi32>
      %c0_i32_27 = arith.constant 0 : i32
      %49 = vector.broadcast %c0_i32_27 : i32 to vector<1x2x10xi32>
      %50 = arith.cmpi eq, %48, %49 : vector<1x2x10xi32>
      %cst_28 = arith.constant 0xFF800000 : f32
      %cst_29 = arith.constant 0.000000e+00 : f32
      %51 = vector.broadcast %cst_28 : f32 to vector<1x2x10xf32>
      %52 = vector.broadcast %cst_29 : f32 to vector<1x2x10xf32>
      %53 = arith.select %50, %51, %52 : vector<1x2x10xi1>, vector<1x2x10xf32>
      %c0_30 = arith.constant 0 : index
      %c0_31 = arith.constant 0 : index
      %c0_32 = arith.constant 0 : index
      %54 = vector.load %arg9[%c0_30, %c0_31, %c0_32] : memref<1x2x10xf32, #tpu.memory_space<vmem>>, vector<1x2x10xf32>
      tpu.vector_store %arg9[%c0_30, %c0_31, %c0_32], %53 {strides = array<i32>} : memref<1x2x10xf32, #tpu.memory_space<vmem>>, vector<1x2x10xf32>,
      %cst_33 = arith.constant 0.000000e+00 : f32
      %55 = vector.broadcast %cst_33 : f32 to vector<1x1x10xf32>
      %c0_34 = arith.constant 0 : index
      %c0_35 = arith.constant 0 : index
      %c0_36 = arith.constant 0 : index
      %56 = vector.load %arg10[%c0_34, %c0_35, %c0_36] : memref<1x1x10xf32, #tpu.memory_space<vmem>>, vector<1x1x10xf32>
      tpu.vector_store %arg10[%c0_34, %c0_35, %c0_36], %55 {strides = array<i32>} : memref<1x1x10xf32, #tpu.memory_space<vmem>>, vector<1x1x10xf32>,
    } else {
    }
    %c0 = arith.constant 0 : index
    %c0_1 = arith.constant 0 : index
    %c0_2 = arith.constant 0 : index
    %3 = vector.load %arg9[%c0, %c0_1, %c0_2] : memref<1x2x10xf32, #tpu.memory_space<vmem>>, vector<1x2x10xf32>
    %c0_3 = arith.constant 0 : index
    %c0_4 = arith.constant 0 : index
    %c0_5 = arith.constant 0 : index
    %4 = vector.load %arg10[%c0_3, %c0_4, %c0_5] : memref<1x1x10xf32, #tpu.memory_space<vmem>>, vector<1x1x10xf32>
    %c0_6 = arith.constant 0 : index
    %c0_7 = arith.constant 0 : index
    %c0_8 = arith.constant 0 : index
    %5 = vector.load %arg2[%c0_6, %c0_7, %c0_8] : memref<1x8x300xf32, #tpu.memory_space<vmem>>, vector<1x8x300xf32>
    %6 = vector.shape_cast %5 : vector<1x8x300xf32> to vector<8x300xf32>
    %c0_9 = arith.constant 0 : index
    %c0_10 = arith.constant 0 : index
    %7 = vector.load %arg3[%c0_9, %c0_10] : memref<300x30xf32, #tpu.memory_space<vmem>>, vector<300x30xf32>
    %cst = arith.constant dense<0.000000e+00> : vector<8x30xf32>
    %8 = tpu.matmul %6, %7, %cst {dimension_numbers = #tpu.dot_dimension_numbers<[1], [0], [0], [1], [0, 0, 1, 1], [], []>} : vector<8x300xf32>, vector<300x30xf32>, vector<8x30xf32> -> vector<8x30xf32>
    %9 = vector.shape_cast %8 : vector<8x30xf32> to vector<1x8x30xf32>
    %10 = vector.extract_strided_slice %9 {offsets = [0, 0, 0], sizes = [1, 8, 10], strides = [1, 1, 1]} : vector<1x8x30xf32> to vector<1x8x10xf32>
    %11 = vector.extract_strided_slice %9 {offsets = [0, 0, 10], sizes = [1, 8, 10], strides = [1, 1, 1]} : vector<1x8x30xf32> to vector<1x8x10xf32>
    %12 = vector.extract_strided_slice %9 {offsets = [0, 0, 20], sizes = [1, 8, 10], strides = [1, 1, 1]} : vector<1x8x30xf32> to vector<1x8x10xf32>
    %13 = vector.extract_strided_slice %3 {offsets = [0, 0, 0], sizes = [1, 1, 10], strides = [1, 1, 1]} : vector<1x2x10xf32> to vector<1x1x10xf32>
    %14 = vector.shape_cast %13 : vector<1x1x10xf32> to vector<1x10xf32>
    %15 = vector.shape_cast %4 : vector<1x1x10xf32> to vector<1x10xf32>
    %16 = arith.addf %14, %15 : vector<1x10xf32>
    %17 = vector.extract_strided_slice %12 {offsets = [0, 0, 0], sizes = [1, 1, 10], strides = [1, 1, 1]} : vector<1x8x10xf32> to vector<1x1x10xf32>
    %18 = vector.shape_cast %17 : vector<1x1x10xf32> to vector<1x10xf32>
    %19 = arith.addf %16, %18 : vector<1x10xf32>
    %20 = vector.extract_strided_slice %3 {offsets = [0, 1, 0], sizes = [1, 1, 10], strides = [1, 1, 1]} : vector<1x2x10xf32> to vector<1x1x10xf32>
    %21 = vector.shape_cast %20 : vector<1x1x10xf32> to vector<1x10xf32>
    %22 = vector.extract_strided_slice %11 {offsets = [0, 0, 0], sizes = [1, 1, 10], strides = [1, 1, 1]} : vector<1x8x10xf32> to vector<1x1x10xf32>
    %23 = vector.shape_cast %22 : vector<1x1x10xf32> to vector<1x10xf32>
    %24 = arith.addf %21, %23 : vector<1x10xf32>
    %25 = vector.extract_strided_slice %12 {offsets = [0, 1, 0], sizes = [1, 1, 10], strides = [1, 1, 1]} : vector<1x8x10xf32> to vector<1x1x10xf32>
    %26 = vector.shape_cast %25 : vector<1x1x10xf32> to vector<1x10xf32>
    %27 = arith.addf %24, %26 : vector<1x10xf32>
    %c0_11 = arith.constant 0 : index
    %c0_12 = arith.constant 0 : index
    %28 = vector.load %arg8[%c0_11, %c0_12] : memref<1x10xf32, #tpu.memory_space<vmem>>, vector<1x10xf32>
    %29 = arith.maximumf %28, %19 : vector<1x10xf32>
    %30 = arith.maximumf %29, %27 : vector<1x10xf32>
    %31 = vector.extract_strided_slice %10 {offsets = [0, 0, 0], sizes = [1, 6, 10], strides = [1, 1, 1]} : vector<1x8x10xf32> to vector<1x6x10xf32>
    %32 = vector.extract_strided_slice %11 {offsets = [0, 1, 0], sizes = [1, 6, 10], strides = [1, 1, 1]} : vector<1x8x10xf32> to vector<1x6x10xf32>
    %33 = arith.addf %31, %32 : vector<1x6x10xf32>
    %34 = vector.extract_strided_slice %12 {offsets = [0, 2, 0], sizes = [1, 6, 10], strides = [1, 1, 1]} : vector<1x8x10xf32> to vector<1x6x10xf32>
    %35 = arith.addf %33, %34 : vector<1x6x10xf32>
    %cst_13 = arith.constant dense<0xFF800000> : vector<1x10xf32>
    %36 = vector.multi_reduction <maximumf>, %35, %cst_13 [1] : vector<1x6x10xf32> to vector<1x10xf32>
    %37 = arith.maximumf %30, %36 : vector<1x10xf32>
    %c0_14 = arith.constant 0 : index
    %c0_15 = arith.constant 0 : index
    %38 = vector.load %arg8[%c0_14, %c0_15] : memref<1x10xf32, #tpu.memory_space<vmem>>, vector<1x10xf32>
    tpu.vector_store %arg8[%c0_14, %c0_15], %37 {strides = array<i32>} : memref<1x10xf32, #tpu.memory_space<vmem>>, vector<1x10xf32>,
    %39 = vector.extract_strided_slice %10 {offsets = [0, 6, 0], sizes = [1, 2, 10], strides = [1, 1, 1]} : vector<1x8x10xf32> to vector<1x2x10xf32>
    %c0_16 = arith.constant 0 : index
    %c0_17 = arith.constant 0 : index
    %c0_18 = arith.constant 0 : index
    %40 = vector.load %arg9[%c0_16, %c0_17, %c0_18] : memref<1x2x10xf32, #tpu.memory_space<vmem>>, vector<1x2x10xf32>
    tpu.vector_store %arg9[%c0_16, %c0_17, %c0_18], %39 {strides = array<i32>} : memref<1x2x10xf32, #tpu.memory_space<vmem>>, vector<1x2x10xf32>,
    %41 = vector.extract_strided_slice %11 {offsets = [0, 7, 0], sizes = [1, 1, 10], strides = [1, 1, 1]} : vector<1x8x10xf32> to vector<1x1x10xf32>
    %c0_19 = arith.constant 0 : index
    %c0_20 = arith.constant 0 : index
    %c0_21 = arith.constant 0 : index
    %42 = vector.load %arg10[%c0_19, %c0_20, %c0_21] : memref<1x1x10xf32, #tpu.memory_space<vmem>>, vector<1x1x10xf32>
    tpu.vector_store %arg10[%c0_19, %c0_20, %c0_21], %41 {strides = array<i32>} : memref<1x1x10xf32, #tpu.memory_space<vmem>>, vector<1x1x10xf32>,
    %c0_i32_22 = arith.constant 0 : i32
    %43 = arith.cmpi eq, %arg1, %c0_i32_22 : i32
    %44 = arith.extui %43 : i1 to i32
    %c0_i32_23 = arith.constant 0 : i32
    %45 = arith.cmpi ne, %44, %c0_i32_23 : i32
    scf.if %45 {
      %46 = vector.extract_strided_slice %10 {offsets = [0, 6, 0], sizes = [1, 1, 10], strides = [1, 1, 1]} : vector<1x8x10xf32> to vector<1x1x10xf32>
      %47 = vector.shape_cast %46 : vector<1x1x10xf32> to vector<1x10xf32>
      %48 = vector.extract_strided_slice %11 {offsets = [0, 7, 0], sizes = [1, 1, 10], strides = [1, 1, 1]} : vector<1x8x10xf32> to vector<1x1x10xf32>
      %49 = vector.shape_cast %48 : vector<1x1x10xf32> to vector<1x10xf32>
      %50 = arith.addf %47, %49 : vector<1x10xf32>
      %c0_24 = arith.constant 0 : index
      %c0_25 = arith.constant 0 : index
      %51 = vector.load %arg8[%c0_24, %c0_25] : memref<1x10xf32, #tpu.memory_space<vmem>>, vector<1x10xf32>
      %52 = arith.maximumf %51, %50 : vector<1x10xf32>
      %c0_26 = arith.constant 0 : index
      %c0_27 = arith.constant 0 : index
      %53 = vector.load %arg4[%c0_26, %c0_27] : memref<1x10xf32, #tpu.memory_space<vmem>>, vector<1x10xf32>
      %54 = arith.addf %52, %53 : vector<1x10xf32>
      %cst_28 = arith.constant 0.000000e+00 : f32
      %55 = vector.broadcast %cst_28 : f32 to vector<1x10xf32>
      %56 = arith.maximumf %54, %55 : vector<1x10xf32>
      %c0_29 = arith.constant 0 : index
      %c0_30 = arith.constant 0 : index
      %57 = vector.load %arg5[%c0_29, %c0_30] : memref<10x1xf32, #tpu.memory_space<vmem>>, vector<10x1xf32>
      %cst_31 = arith.constant dense<0.000000e+00> : vector<1x1xf32>
      %58 = tpu.matmul %56, %57, %cst_31 {dimension_numbers = #tpu.dot_dimension_numbers<[1], [0], [0], [1], [0, 0, 1, 1], [], []>} : vector<1x10xf32>, vector<10x1xf32>, vector<1x1xf32> -> vector<1x1xf32>
      %c0_32 = arith.constant 0 : index
      %c0_33 = arith.constant 0 : index
      %59 = vector.load %arg6[%c0_32, %c0_33] : memref<1x1xf32, #tpu.memory_space<vmem>>, vector<1x1xf32>
      %60 = arith.addf %58, %59 : vector<1x1xf32>
      %c0_34 = arith.constant 0 : index
      %c0_35 = arith.constant 0 : index
      %c0_36 = arith.constant 0 : index
      %61 = vector.load %arg7[%c0_34, %c0_35, %c0_36] : memref<1x1x1xf32, #tpu.memory_space<vmem>>, vector<1x1x1xf32>
      %62 = vector.shape_cast %61 : vector<1x1x1xf32> to vector<1x1xf32>
      %63 = vector.shape_cast %60 : vector<1x1xf32> to vector<1x1x1xf32>
      tpu.vector_store %arg7[%c0_34, %c0_35, %c0_36], %63 {strides = array<i32>} : memref<1x1x1xf32, #tpu.memory_space<vmem>>, vector<1x1x1xf32>,
    } else {
    }
    return
  }
  func.func @transform_0(%arg0: i32, %arg1: i32) -> (i32, i32, i32) {
    %c0_i32 = arith.constant 0 : i32
    %c0_i32_0 = arith.constant 0 : i32
    return %arg0, %arg1, %c0_i32 : i32, i32, i32
  }
  func.func @transform_1(%arg0: i32, %arg1: i32) -> (i32, i32) {
    %c0_i32 = arith.constant 0 : i32
    %c0_i32_0 = arith.constant 0 : i32
    %c0_i32_1 = arith.constant 0 : i32
    return %c0_i32, %c0_i32_0 : i32, i32
  }
  func.func @transform_2(%arg0: i32, %arg1: i32) -> (i32, i32) {
    %c0_i32 = arith.constant 0 : i32
    %c0_i32_0 = arith.constant 0 : i32
    %c0_i32_1 = arith.constant 0 : i32
    return %c0_i32, %c0_i32_0 : i32, i32
  }
  func.func @transform_3(%arg0: i32, %arg1: i32) -> (i32, i32) {
    %c0_i32 = arith.constant 0 : i32
    %c0_i32_0 = arith.constant 0 : i32
    %c0_i32_1 = arith.constant 0 : i32
    return %c0_i32, %c0_i32_0 : i32, i32
  }
  func.func @transform_4(%arg0: i32, %arg1: i32) -> (i32, i32) {
    %c0_i32 = arith.constant 0 : i32
    %c0_i32_0 = arith.constant 0 : i32
    %c0_i32_1 = arith.constant 0 : i32
    return %c0_i32, %c0_i32_0 : i32, i32
  }
  func.func @transform_5(%arg0: i32, %arg1: i32) -> (i32, i32, i32) {
    %c0_i32 = arith.constant 0 : i32
    %c0_i32_0 = arith.constant 0 : i32
    %c0_i32_1 = arith.constant 0 : i32
    return %arg0, %c0_i32, %c0_i32_0 : i32, i32, i32
  }
}

</mosaic_0001>

<bundles_post_ra>
// kernel: tpu_custom_call.1
= control target key start
LH: loop header
LB: loop body
LE: loop exit
PB: predicated region body
PF: predicated region fallthrough
CT: control target
= control target key end

     0   :  { %s859_s20 = smov 0   ;;  %s861_s21 = smov 0   ;;  %s1041_s0 = inlined_call_operand.vmem [shape: f32[2,8,300], index: 0, kind: input, shape index: {}]   ;;  %s1042_s1 = inlined_call_operand.vmem [shape: f32[300,30], index: 1, kind: input, shape index: {}]   ;;  %s1043_s2 = inlined_call_operand.vmem [shape: f32[1,10], index: 2, kind: input, shape index: {}]   ;;  %s1044_s3 = inlined_call_operand.vmem [shape: f32[10,1], index: 3, kind: input, shape index: {}]   ;;  %s1045_s4 = inlined_call_operand.<no memory space> [shape: f32[1,1], index: 4, kind: input, shape index: {}]   ;;  %s1046_s5 = inlined_call_operand.vmem [shape: f32[2,1,1], index: 5, kind: output, shape index: {}]  }
   0x1   :  { %v10_v0 = vstv %s1045_s4  ;;  %s863_s22 = smov 0  }
   0x2   :  { %11 = vst [vmem:[#allocation5] sm:$0x1] %v10_v0 }
   0x3 LB: > { %s29_s4 = sadd.s32 1, %s814_s21  ;;  %p690_p0 = scmp.ge.s32.totalorder %s818_s22, 1  ;;  %s818_s22 = sphi %s863_s22, %s17_s22   ;;  %s814_s21 = sphi %s861_s21, %s1048_s21   ;;  %s810_s20 = sphi %s859_s20, %s1047_s20  }
   0x4   : > { %p31_p1 = scmp.ge.s32.totalorder %s29_s4, 2  ;;  %p207_p2 = scmp.lt.s32.totalorder %s818_s22, 3 }
   0x6   : > { %s1050_s4 = smov (%p31_p1, %s29_s4), 0  ;;  %p208_p3 = pnand %p690_p0, %p207_p2 }
   0x7   : > { %p237_p4 = scmp.lt.s32.totalorder (!%p208_p3), %s810_s20, 1  ;;  %s824_s14 = smov (!%p208_p3), 108  }
   0x8   : > { %211 = sbr.rel (%p208_p3) target bundleno = 593 (0x251), region = 40 }
   0xd   : > { %v298_v1 = vld [vmem:[%s1042_s1 + $0xf8] sm:$0xff]  ;;  %v297_v3 = vld [vmem:[%s1042_s1 + $0xf0] sm:$0xff]  ;;  %v820_v5 = vmov 0.0   ;;  %v296_v6 = vld [vmem:[%s1042_s1 + $0xe8] sm:$0xff]  ;;  %vm821_vm0 = vmmov 0   ;;  %s1052_s20 = smov (!%p237_p4, %s810_s20), 1  ;;  %v255_v43 = vlaneseq }
   0xe   : > { %v282_v2 = vld [vmem:[%s1042_s1 + $0x78] sm:$0xff]  ;;  %698 = vmatprep.subr.mxu0 %v298_v1  ;;  %v281_v4 = vld [vmem:[%s1042_s1 + $0x70] sm:$0xff]  ;;  %743 = vmatprep.subr.mxu1 %v820_v5  ;;  %v280_v7 = vld [vmem:[%s1042_s1 + $0x68] sm:$0xff]  ;;  %vm309_vm1 = vcmask 1043456   ;;  %s765_s18 = smul.u32 24, %s1052_s20  ;;  %vm305_vm2 = vcmask 359424   ;;  %s248_s26 = scalar_lea.vmem %s1046_s5, %s1052_s20 }
   0xf   : > { %699 = vmatpush3.msra.mxu0 %v282_v2  ;;  %755 = vmatprep.mubr.msk.f32.mxu1 %vm821_vm0, %v820_v5  ;;  %v295_v8 = vld [vmem:[%s1042_s1 + $0xe0] sm:$0xff]  ;;  %v294_v10 = vld [vmem:[%s1042_s1 + $0xd8] sm:$0xff]  ;;  %v293_v12 = vld [vmem:[%s1042_s1 + $0xd0] sm:$0xff]  ;;  %v256_v44 = vshrl.u32 %v255_v43, 7  ;;  %vm259_vm4 = vcmask 74752   ;;  %vm253_vm5 = vcmask 73728  }
  0x10   : > { %700 = vmatprep.subr.mxu0 %v297_v3  ;;  %v279_v9 = vld [vmem:[%s1042_s1 + $0x60] sm:$0xff]  ;;  %v278_v11 = vld [vmem:[%s1042_s1 + $0x58] sm:$0xff]  ;;  %v304_v13 = vld [vmem:[%s1042_s1 + $0x128] sm:$0xf]  ;;  %s938_s13 = scalar_lea.vmem %s1041_s0, %s765_s18  ;;  %261 = vst.msk [vmem:[#allocation4] sm:$0x1] %vm253_vm5, %v820_v5 }
  0x11   : > { %701 = vmatpush3.msra.mxu0 %v281_v4  ;;  %v277_v14 = vld [vmem:[%s1042_s1 + $0x50] sm:$0xff]  ;;  %744 = vmatpush3.msk.msra.mxu1 %vm309_vm1, %v304_v13  ;;  %v303_v15 = vld [vmem:[%s1042_s1 + $0x120] sm:$0xff]  ;;  %v292_v16 = vld [vmem:[%s1042_s1 + $0xc8] sm:$0xff]  ;;  %vm257_vm3 = vcmp.eq.s32.totalorder %v256_v44, 0  ;;  %v822_v48 = vmov -inf   ;;  %vm506_vm6 = vcmask 80902  }
  0x12   : > { %702 = vmatprep.subr.mxu0 %v296_v6  ;;  %745 = vmatprep.subr.mxu1 %v820_v5  ;;  %v302_v17 = vld [vmem:[%s1042_s1 + $0x118] sm:$0xff]  ;;  %v276_v18 = vld [vmem:[%s1042_s1 + $0x48] sm:$0xff]  ;;  %v291_v19 = vld [vmem:[%s1042_s1 + $0xc0] sm:$0xff]  ;;  %v258_v45 = vsel %vm257_vm3, -inf, %v820_v5  ;;  %254 = vst.msk [vmem:[#allocation2] sm:$0x1] %vm253_vm5, %v822_v48 }
  0x13   : > { %703 = vmatpush3.msra.mxu0 %v280_v7  ;;  %746 = vmatpush3.msra.mxu1 %v303_v15  ;;  %v301_v20 = vld [vmem:[%s1042_s1 + $0x110] sm:$0xff]  ;;  %v275_v21 = vld [vmem:[%s1042_s1 + $0x40] sm:$0xff]  ;;  %v290_v22 = vld [vmem:[%s1042_s1 + $0xb8] sm:$0xff]  ;;  %260 = vst.msk [vmem:[#allocation3] sm:$0x3] %vm259_vm4, %v258_v45  ;;  %vm546_vm7 = vcmask 1041408  }
  0x14   : > { %704 = vmatprep.subr.mxu0 %v295_v8  ;;  %747 = vmatprep.subr.mxu1 %v820_v5  ;;  %v265_v23 = vld [vmem:[%s938_s13 + $0x8] sm:$0xff]  ;;  %v274_v24 = vld [vmem:[%s1042_s1 + $0x38] sm:$0xff]  ;;  %v289_v26 = vld [vmem:[%s1042_s1 + $0xb0] sm:$0xff]  ;;  %v825_v59 = vmov 1966171168   ;;  %vm495_vm8 = vcmask 78848  }
  0x15   : > { %705 = vmatpush3.msra.mxu0 %v279_v9  ;;  %748 = vmatpush3.msra.mxu1 %v302_v17  ;;  %v300_v25 = vld [vmem:[%s1042_s1 + $0x108] sm:$0xff]  ;;  %v273_v27 = vld [vmem:[%s1042_s1 + $0x30] sm:$0xff]  ;;  %v299_v28 = vld [vmem:[%s1042_s1 + $0x100] sm:$0xff]  ;;  %v469_v60 = vunpack.c.l.s4 %v825_v59  ;;  %vm511_vm9 = vcmask 80903   ;;  %vm542_vm10 = vcmask 80896   ;;  %vm620_vm11 = vcmask 0  }
  0x16   : > { %706 = vmatprep.subr.mxu0 %v294_v10  ;;  %749 = vmatprep.subr.mxu1 %v820_v5  ;;  %v288_v29 = vld [vmem:[%s1042_s1 + $0xa8] sm:$0xff]  ;;  %v266_v30 = vld [vmem:[%s938_s13 + $0x10] sm:$0xff]  ;;  %v287_v32 = vld [vmem:[%s1042_s1 + $0xa0] sm:$0xff] }
  0x17   : > { %707 = vmatpush3.msra.mxu0 %v278_v11  ;;  %750 = vmatpush3.msra.mxu1 %v301_v20  ;;  %v272_v31 = vld [vmem:[%s1042_s1 + $0x28] sm:$0xff]  ;;  %v271_v33 = vld [vmem:[%s1042_s1 + $0x20] sm:$0xff]  ;;  %v286_v34 = vld [vmem:[%s1042_s1 + $0x98] sm:$0xff]  ;;  %v470_v63 = vunpack.c.0.s8 %v469_v60 }
  0x18   : > { %708 = vmatprep.subr.mxu0 %v293_v12  ;;  %751 = vmatprep.subr.mxu1 %v820_v5  ;;  %v270_v35 = vld [vmem:[%s1042_s1 + $0x18] sm:$0xff]  ;;  %v285_v36 = vld [vmem:[%s1042_s1 + $0x90] sm:$0xff]  ;;  %v284_v38 = vld [vmem:[%s1042_s1 + $0x88] sm:$0xff] }
  0x19   : > { %709 = vmatpush3.msra.mxu0 %v277_v14  ;;  %377 = vmatprep.mubr.f32.mxu0 %v265_v23  ;;  %v269_v37 = vld [vmem:[%s1042_s1 + $0x10] sm:$0xff]  ;;  %v268_v39 = vld [vmem:[%s1042_s1 + $0x8] sm:$0xff]  ;;  %v283_v40 = vld [vmem:[%s1042_s1 + $0x80] sm:$0xff]  ;;  %v473_v4 = vsub.s32 %v470_v63, %v256_v44 }
  0x1a   : > { %710 = vmatprep.subr.mxu0 %v292_v16  ;;  %752 = vmatpush3.msra.mxu1 %v300_v25  ;;  %v267_v41 = vld [vmem:[%s1042_s1] sm:$0xff]  ;;  %v540_v57 = vld [vmem:[%s1044_s3 + $0x8] sm:$0x3] }
  0x1b   : > { %711 = vmatpush3.msra.mxu0 %v276_v18  ;;  %753 = vmatprep.subr.mxu1 %v820_v5  ;;  %v264_v42 = vld [vmem:[%s938_s13] sm:$0xff]  ;;  %s823_s13 = smov 118  }
  0x1c   : > { %712 = vmatprep.subr.mxu0 %v291_v19  ;;  %754 = vmatpush3.msra.mxu1 %v299_v28  ;;  %v262_v52 = vld [vmem:[#allocation3] sm:$0x3]  ;;  %v263_v7 = vld [vmem:[#allocation4] sm:$0x1]  ;;  %v465_v17 = vld [vmem:[#allocation2] sm:$0x1] }
  0x1d   : > { %713 = vmatpush3.msra.mxu0 %v275_v21  ;;  %756 = vmatmul.mubr.msk.f32.vlgmr.msra.gmra.mxu1 %vm305_vm2, %v266_v30  ;;  %v539_v58 = vld [vmem:[%s1044_s3] sm:$0xff] }
  0x1e   : > { %714 = vmatprep.subr.mxu0 %v290_v22  ;;  %758 = vmatprep.subr.mxu1 %v820_v5  ;;  %v536_v30 = vld [vmem:[%s1043_s2] sm:$0x1] }
  0x1f   : > { %715 = vmatpush3.msra.mxu0 %v274_v24  ;;  %762 = vmatprep.mubr.msk.f32.mxu1 %vm821_vm0, %v820_v5 }
  0x20   : > { %716 = vmatprep.subr.mxu0 %v289_v26  ;;  %759 = vmatpush3.msk.msra.mxu1 %vm546_vm7, %v540_v57 }
  0x21   : > { %717 = vmatpush3.msra.mxu0 %v273_v27  ;;  %760 = vmatprep.subr.mxu1 %v820_v5  ;;  %v453_v5 = vadd.f32 %v263_v7, %v262_v52 }
  0x22   : > { %718 = vmatprep.subr.mxu0 %v288_v29  ;;  %761 = vmatpush3.msra.mxu1 %v539_v58 }
  0x23   : > { %719 = vmatpush3.msra.mxu0 %v272_v31 }
  0x24   : > { %720 = vmatprep.subr.mxu0 %v287_v32 }
  0x25   : > { %721 = vmatpush3.msra.mxu0 %v271_v33 }
  0x26   : > { %722 = vmatprep.subr.mxu0 %v286_v34  ;;  %v541_v34 = vld [vmem:[#allocation5] sm:$0x1] }
  0x27   : > { %723 = vmatpush3.msra.mxu0 %v270_v35 }
  0x28   : > { %724 = vmatprep.subr.mxu0 %v285_v36 }
  0x29   : > { %725 = vmatpush3.msra.mxu0 %v269_v37 }
  0x2a   : > { %726 = vmatprep.subr.mxu0 %v284_v38 }
  0x2b   : > { %727 = vmatpush3.msra.mxu0 %v268_v39 }
  0x2c   : > { %728 = vmatprep.subr.mxu0 %v283_v40 }
  0x2d   : > { %729 = vmatpush3.msra.mxu0 %v267_v41 }
  0x2e   : > { %378 = vmatmul.mubr.f32.vlgmr.msra.gmra.mxu0 %v264_v42 }
  0xdd   : > { %v449_v46 = vpop.f32.mrf.mxu1 }
  0xdf   : > { %v757_v47 = vpop.f32.mrf.mxu1 }
  0xee   : > { %v730_v49 = vpop.f32.mrf.mxu0 }
  0xf0   : > { %v731_v50 = vpop.f32.mrf.mxu0 }
  0xf1   : > { %v732_v51 = vadd.f32 %v731_v50, %v730_v49 }
  0xf3   : > { %v450_v53 = vadd.f32 %v732_v51, %v449_v46 }
  0xf5   : > { %v485_v54 = vrot.slane %v450_v53, 1  ;;  %v459_v55 = vrot.slane %v450_v53, 7  ;;  %507 = vst.msk [vmem:[#allocation3 - $0x6] sm:$0xc0] %vm506_vm6, %v450_v53  ;;  %v490_v56 = vrot.slane %v450_v53, 2 }
  0xf7   : > { %486 = vrot.lane.b32.xlu0 %v485_v54, %s823_s13  ;;  %460 = vrot.lane.b32.xlu1 %v459_v55, %s823_s13 }
  0xfb   : > { %491 = vrot.lane.b32.xlu0 %v490_v56, %s824_s14  ;;  %455 = vrot.lane.b32.xlu1 %v450_v53, %s824_s14 }
  0xff   : > { %508 = vrot.lane.b32.xlu0 %v450_v53, %s823_s13 }
 0x169   : > { %v487_v61 = vpop.permute.xlu0 %486  ;;  %v461_v62 = vpop.permute.xlu1 %460 }
 0x16a   : > { %v489_v0 = vadd.f32 %v487_v61, %v450_v53  ;;  %v463_v1 = vadd.f32 %v461_v62, %v262_v52 }
 0x16c   : > { %v518_v20 = vcombine.high %v489_v0, %v489_v0 }
 0x16d   : > { %v492_v2 = vpop.permute.xlu0 %491  ;;  %v456_v3 = vpop.permute.xlu1 %455 }
 0x16e   : > { %v494_v6 = vadd.f32 %v492_v2, %v489_v0  ;;  %v464_v8 = vadd.f32 %v463_v1, %v456_v3  ;;  %v458_v16 = vadd.f32 %v456_v3, %v453_v5  ;;  %v525_v25 = vrot.slane %v518_v20, %v473_v4 }
 0x170   : > { %v496_v9 = vsel %vm495_vm8, %v494_v6, -inf  ;;  %v474_v10 = vrot.slane %v464_v8, %v473_v4  ;;  %v466_v22 = vmax.f32 %v465_v17, %v458_v16  ;;  %v532_v27 = vrot.slane %v525_v25, %v473_v4 }
 0x171   : > { %v497_v11 = vrot.slane %v496_v9, 4  ;;  %v509_v12 = vpop.permute.xlu0 %508 }
 0x172   : > { %512 = vst.msk [vmem:[#allocation4 - $0x7] sm:$0x80] %vm511_vm9, %v509_v12  ;;  %v475_v14 = vcombine.high %v474_v10, %v474_v10  ;;  %v533_v28 = vcombine.high %v532_v27, %v532_v27 }
 0x173   : > { %v498_v13 = vmax.f32 %v496_v9, %v497_v11 }
 0x174   : > { %v482_v19 = vrot.slane %v475_v14, %v473_v4 }
 0x175   : > { %v499_v15 = vrot.slane %v498_v13, 2 }
 0x176   : > { %v484_v24 = vmax.f32 %v466_v22, %v482_v19 }
 0x177   : > { %v500_v18 = vmax.f32 %v498_v13, %v499_v15 }
 0x179   : > { %v501_v21 = vrot.slane %v500_v18, 1 }
 0x17b   : > { %v502_v23 = vmax.f32 %v500_v18, %v501_v21 }
 0x17d   : > { %v503_v26 = vmax.f32 %v484_v24, %v502_v23 }
 0x17f   : > { %505 = vst.msk [vmem:[#allocation2] sm:$0x1] %vm253_vm5, %v503_v26 }
 0x186   : > { %v516_v29 = vld [vmem:[#allocation2] sm:$0x1] }
 0x187   : > { %v535_v31 = vmax.f32 %v516_v29, %v533_v28 }
 0x189   : > { %v537_v32 = vadd.f32 %v536_v30, %v535_v31 }
 0x18b   : > { %v538_v33 = vmax.f32 %v537_v32, 0.0 }
 0x18d   : > { %763 = vmatmul.mubr.msk.f32.vlgmr.msra.gmra.mxu1 %vm542_vm10, %v538_v33 }
 0x24d   : > { %v616_v35 = vpop.f32.mrf.mxu1 }
 0x24e   : > { %v617_v36 = vadd.f32 %v616_v35, %v541_v34 }
 0x24f   : > { %v764_v37 = vpop.f32.mrf.mxu1 }
 0x250   : > { %621 = vst.msk [vmem:[%s248_s26] sm:$0x1] %vm620_vm11, %v617_v36 }
 0x251 PF: > { %s17_s22 = sadd.s32 1, %s818_s22   ;;  %s1047_s20 = smov %s814_s21 }
 0x252   : > { %p14_p5 = scmp.ge.s32.totalorder %s17_s22, 4   ;;  %s1048_s21 = smov %s1050_s4 }
 0x254   :  { %16 = sbr.rel (!%p14_p5) target bundleno = 3 (0x3), region = 78 }

</bundles_post_ra>
